<compile_context>
chip_gen: v6e
topology: v6e:2x2x1
jax: 0.10.0
libtpu: 0.0.40
codegen_flags: <defaults>
</compile_context>

<pallas_src>
import jax
import jax.numpy as jnp
from jax.experimental import pallas as pl
from jax.experimental.pallas import tpu as pltpu


def _round_up(a, b):
    return (a + b - 1) // b * b


def fcblock_kernel(x_ref, gamma_ref, beta_ref, w1_ref, b1_ref, w2_ref, b2_ref, o_ref):
    # Single load of the x tile; reused at the end for the residual add.
    x = x_ref[...].astype(jnp.float32)                        # (tm, E)

    # LayerNorm over the embedding (last) axis, eps matches PyTorch default 1e-5.
    mean = jnp.mean(x, axis=-1, keepdims=True)
    xc = x - mean
    var = jnp.mean(xc * xc, axis=-1, keepdims=True)
    h = xc * jax.lax.rsqrt(var + 1e-5) * gamma_ref[...] + beta_ref[...]

    # GELU (tanh approximation -> EUP; ~1e-3 deviation from PyTorch's exact-erf default).
    h = jax.nn.gelu(h, approximate=True)

    # Linear E -> 4E on the MXU: bf16 inputs, f32 accumulation.
    h = jnp.dot(h.astype(jnp.bfloat16), w1_ref[...],
                preferred_element_type=jnp.float32) + b1_ref[...]

    h = jax.nn.gelu(h, approximate=True)

    # Linear 4E -> E on the MXU: bf16 inputs, f32 accumulation.
    h = jnp.dot(h.astype(jnp.bfloat16), w2_ref[...],
                preferred_element_type=jnp.float32) + b2_ref[...]

    # Dropout = identity (eval mode), then residual add (reuses loaded x).
    o_ref[...] = (x + h).astype(o_ref.dtype)


def fcblock_forward(x, gamma, beta, w1, b1, w2, b2, *, tm=256):
    """x: [B, S, E] float32. Weights follow y = x @ W + b (W1: [E, 4E], W2: [4E, E]),
    i.e. W = torch_linear.weight.T."""
    B, S, E = x.shape
    H = w1.shape[1]
    M = B * S

    # Row tile: big enough to feed the MXU at realistic M, clamped for tiny inputs,
    # always a multiple of 8 (f32 sublane).
    tm = max(8, min(tm, _round_up(M, 8)))
    if M > 2 * 128 and pl.cdiv(M, tm) < 2:
        tm = _round_up(pl.cdiv(M, 2), 8)   # keep >= 2 grid steps (v7x has 2 TensorCores)

    Mp = _round_up(M, tm)                  # pad rows so the grid covers all of M
    x2 = x.reshape(M, E).astype(jnp.float32)
    if Mp != M:
        x2 = jnp.pad(x2, ((0, Mp - M), (0, 0)))   # zero rows stay finite through LN/GELU/linear

    # bf16 weights: half the DMA / resident VMEM, MXU bf16 throughput.
    w1b = w1.astype(jnp.bfloat16)
    w2b = w2.astype(jnp.bfloat16)

    grid = (Mp // tm,)

    cost = pl.CostEstimate(
        flops=4 * Mp * E * H,                         # two matmuls (2*M*E*H each)
        transcendentals=Mp * (E + H + 1),             # two tanh-GELUs + rsqrt
        bytes_accessed=(2 * Mp * E * 4                # x in + out (f32)
                        + 2 * (E * H + H * E)         # bf16 weights
                        + (3 * E + H) * 4),           # gamma/beta/biases (f32)
    )

    out = pl.pallas_call(
        fcblock_kernel,
        out_shape=jax.ShapeDtypeStruct((Mp, E), x.dtype),
        grid_spec=pltpu.PrefetchScalarGridSpec(
            num_scalar_prefetch=0,
            grid=grid,
            in_specs=[
                pl.BlockSpec((tm, E), lambda i: (i, 0)),   # x row tile
                pl.BlockSpec((1, E), lambda i: (0, 0)),    # LayerNorm gamma
                pl.BlockSpec((1, E), lambda i: (0, 0)),    # LayerNorm beta
                pl.BlockSpec((E, H), lambda i: (0, 0)),    # W1 (bf16, resident)
                pl.BlockSpec((1, H), lambda i: (0, 0)),    # b1
                pl.BlockSpec((H, E), lambda i: (0, 0)),    # W2 (bf16, resident)
                pl.BlockSpec((1, E), lambda i: (0, 0)),    # b2
            ],
            out_specs=pl.BlockSpec((tm, E), lambda i: (i, 0)),
        ),
        compiler_params=pltpu.CompilerParams(
            dimension_semantics=("parallel",),
            vmem_limit_bytes=56 * 1024 * 1024,   # > 16/32 MiB scoped defaults, fits v7x's 64 MiB
        ),
        cost_estimate=cost,
    )(x2, gamma, beta, w1b, b1, w2b, b2)
    return out[:M].reshape(B, S, E)


def reference_forward(x, gamma, beta, w1, b1, w2, b2):
    # PyTorch semantics: f32, exact-erf GELU, eval-mode dropout.
    xf = x.astype(jnp.float32)
    mean = jnp.mean(xf, axis=-1, keepdims=True)
    var = jnp.mean((xf - mean) ** 2, axis=-1, keepdims=True)
    h = (xf - mean) * jax.lax.rsqrt(var + 1e-5) * gamma[0] + beta[0]
    h = jax.nn.gelu(h, approximate=False)
    h = h @ w1 + b1[0]
    h = jax.nn.gelu(h, approximate=False)
    h = h @ w2 + b2[0]
    return xf + h


if __name__ == "__main__":
    E = 128                       # lane-aligned embedding
    H = 4 * E

    key = jax.random.PRNGKey(0)
    kx1, kx2, kw1, kb1, kw2, kb2 = jax.random.split(key, 6)

    # Deterministic parameter init (mimic PyTorch nn.Linear uniform(-1/sqrt(fan_in), ...)).
    lim1 = 1.0 / float(E) ** 0.5
    lim2 = 1.0 / float(H) ** 0.5
    w1 = jax.random.uniform(kw1, (E, H), jnp.float32, -lim1, lim1)
    b1 = jax.random.uniform(kb1, (1, H), jnp.float32, -lim1, lim1)
    w2 = jax.random.uniform(kw2, (H, E), jnp.float32, -lim2, lim2)
    b2 = jax.random.uniform(kb2, (1, E), jnp.float32, -lim2, lim2)
    gamma = jnp.ones((1, E), jnp.float32)   # PyTorch LayerNorm init
    beta = jnp.zeros((1, E), jnp.float32)

    # Tolerance covers bf16 matmul inputs + tanh-GELU vs. the pure-f32 erf reference.
    ATOL = RTOL = 5e-2

    # Test 1: tiny shape (tm clamps to M, single grid step).
    B, S = 2, 8
    x = jax.random.normal(kx1, (B, S, E), dtype=jnp.float32)
    out = jax.block_until_ready(fcblock_forward(x, gamma, beta, w1, b1, w2, b2))
    ref = reference_forward(x, gamma, beta, w1, b1, w2, b2)
    assert out.shape == (B, S, E)
    assert bool(jnp.all(jnp.isfinite(out)))
    assert jnp.allclose(out, ref, atol=ATOL, rtol=RTOL), float(jnp.max(jnp.abs(out - ref)))

    # Test 2: M = 400 (not a multiple of tm) -> exercises padding + 2-step parallel grid.
    B2, S2 = 4, 100
    xl = jax.random.normal(kx2, (B2, S2, E), dtype=jnp.float32)
    out2 = jax.block_until_ready(fcblock_forward(xl, gamma, beta, w1, b1, w2, b2))
    ref2 = reference_forward(xl, gamma, beta, w1, b1, w2, b2)
    assert out2.shape == (B2, S2, E)
    assert bool(jnp.all(jnp.isfinite(out2)))
    assert jnp.allclose(out2, ref2, atol=ATOL, rtol=RTOL), float(jnp.max(jnp.abs(out2 - ref2)))

    print("KERNEL_OK")
</pallas_src>

<mosaic_0001>
module attributes {stable_mosaic.version = 11 : i64} {
  func.func @fcblock_kernel(%arg0: i32, %arg1: memref<16x128xf32, #tpu.memory_space<vmem>>, %arg2: memref<1x128xf32, #tpu.memory_space<vmem>>, %arg3: memref<1x128xf32, #tpu.memory_space<vmem>>, %arg4: memref<128x512xbf16, #tpu.memory_space<vmem>>, %arg5: memref<1x512xf32, #tpu.memory_space<vmem>>, %arg6: memref<512x128xbf16, #tpu.memory_space<vmem>>, %arg7: memref<1x128xf32, #tpu.memory_space<vmem>>, %arg8: memref<16x128xf32, #tpu.memory_space<vmem>>) attributes {dimension_semantics = [#tpu.dimension_semantics<parallel>], iteration_bounds = array<i64: 1>, scalar_prefetch = 0 : i64, scratch_operands = 0 : i64, tpu.core_type = #tpu.core_type<tc>, window_params = [{transform_indices = @transform_0, window_bounds = array<i64: 16, 128>}, {pipeline_mode = #tpu.pipeline_mode<synchronous>, transform_indices = @transform_1, window_bounds = array<i64: 1, 128>}, {pipeline_mode = #tpu.pipeline_mode<synchronous>, transform_indices = @transform_2, window_bounds = array<i64: 1, 128>}, {pipeline_mode = #tpu.pipeline_mode<synchronous>, transform_indices = @transform_3, window_bounds = array<i64: 128, 512>}, {pipeline_mode = #tpu.pipeline_mode<synchronous>, transform_indices = @transform_4, window_bounds = array<i64: 1, 512>}, {pipeline_mode = #tpu.pipeline_mode<synchronous>, transform_indices = @transform_5, window_bounds = array<i64: 512, 128>}, {pipeline_mode = #tpu.pipeline_mode<synchronous>, transform_indices = @transform_6, window_bounds = array<i64: 1, 128>}, {transform_indices = @transform_7, window_bounds = array<i64: 16, 128>}]} {
    %c0 = arith.constant 0 : index
    %c0_0 = arith.constant 0 : index
    %0 = vector.load %arg1[%c0, %c0_0] : memref<16x128xf32, #tpu.memory_space<vmem>>, vector<16x128xf32>
    %cst = arith.constant dense<0.000000e+00> : vector<16xf32>
    %1 = vector.multi_reduction <add>, %0, %cst [1] : vector<16x128xf32> to vector<16xf32>
    %2 = vector.shape_cast %1 : vector<16xf32> to vector<16x1xf32>
    %cst_1 = arith.constant 1.280000e+02 : f32
    %3 = vector.broadcast %cst_1 : f32 to vector<16x1xf32>
    %4 = arith.divf %2, %3 : vector<16x1xf32>
    %5 = vector.broadcast %4 : vector<16x1xf32> to vector<16x128xf32>
    %6 = arith.subf %0, %5 : vector<16x128xf32>
    %7 = arith.mulf %6, %6 : vector<16x128xf32>
    %cst_2 = arith.constant dense<0.000000e+00> : vector<16xf32>
    %8 = vector.multi_reduction <add>, %7, %cst_2 [1] : vector<16x128xf32> to vector<16xf32>
    %9 = vector.shape_cast %8 : vector<16xf32> to vector<16x1xf32>
    %cst_3 = arith.constant 1.280000e+02 : f32
    %10 = vector.broadcast %cst_3 : f32 to vector<16x1xf32>
    %11 = arith.divf %9, %10 : vector<16x1xf32>
    %cst_4 = arith.constant 9.99999974E-6 : f32
    %12 = vector.broadcast %cst_4 : f32 to vector<16x1xf32>
    %13 = arith.addf %11, %12 : vector<16x1xf32>
    %14 = math.rsqrt %13 : vector<16x1xf32>
    %15 = vector.broadcast %14 : vector<16x1xf32> to vector<16x128xf32>
    %16 = arith.mulf %6, %15 : vector<16x128xf32>
    %c0_5 = arith.constant 0 : index
    %c0_6 = arith.constant 0 : index
    %17 = vector.load %arg2[%c0_5, %c0_6] : memref<1x128xf32, #tpu.memory_space<vmem>>, vector<1x128xf32>
    %18 = vector.broadcast %17 : vector<1x128xf32> to vector<16x128xf32>
    %19 = arith.mulf %16, %18 : vector<16x128xf32>
    %c0_7 = arith.constant 0 : index
    %c0_8 = arith.constant 0 : index
    %20 = vector.load %arg3[%c0_7, %c0_8] : memref<1x128xf32, #tpu.memory_space<vmem>>, vector<1x128xf32>
    %21 = vector.broadcast %20 : vector<1x128xf32> to vector<16x128xf32>
    %22 = arith.addf %19, %21 : vector<16x128xf32>
    %23 = arith.mulf %22, %22 : vector<16x128xf32>
    %24 = arith.mulf %22, %23 : vector<16x128xf32>
    %cst_9 = arith.constant 4.471500e-02 : f32
    %25 = vector.broadcast %cst_9 : f32 to vector<16x128xf32>
    %26 = arith.mulf %25, %24 : vector<16x128xf32>
    %27 = arith.addf %22, %26 : vector<16x128xf32>
    %cst_10 = arith.constant 0.797884583 : f32
    %28 = vector.broadcast %cst_10 : f32 to vector<16x128xf32>
    %29 = arith.mulf %28, %27 : vector<16x128xf32>
    %30 = math.tanh %29 : vector<16x128xf32>
    %cst_11 = arith.constant 1.000000e+00 : f32
    %31 = vector.broadcast %cst_11 : f32 to vector<16x128xf32>
    %32 = arith.addf %31, %30 : vector<16x128xf32>
    %cst_12 = arith.constant 5.000000e-01 : f32
    %33 = vector.broadcast %cst_12 : f32 to vector<16x128xf32>
    %34 = arith.mulf %33, %32 : vector<16x128xf32>
    %35 = arith.mulf %22, %34 : vector<16x128xf32>
    %36 = arith.truncf %35 : vector<16x128xf32> to vector<16x128xbf16>
    %c0_13 = arith.constant 0 : index
    %c0_14 = arith.constant 0 : index
    %37 = vector.load %arg4[%c0_13, %c0_14] : memref<128x512xbf16, #tpu.memory_space<vmem>>, vector<128x512xbf16>
    %cst_15 = arith.constant dense<0.000000e+00> : vector<16x512xf32>
    %38 = tpu.matmul %36, %37, %cst_15 {dimension_numbers = #tpu.dot_dimension_numbers<[1], [0], [0], [1], [0, 0, 1, 1], [], []>} : vector<16x128xbf16>, vector<128x512xbf16>, vector<16x512xf32> -> vector<16x512xf32>
    %c0_16 = arith.constant 0 : index
    %c0_17 = arith.constant 0 : index
    %39 = vector.load %arg5[%c0_16, %c0_17] : memref<1x512xf32, #tpu.memory_space<vmem>>, vector<1x512xf32>
    %40 = vector.broadcast %39 : vector<1x512xf32> to vector<16x512xf32>
    %41 = arith.addf %38, %40 : vector<16x512xf32>
    %42 = arith.mulf %41, %41 : vector<16x512xf32>
    %43 = arith.mulf %41, %42 : vector<16x512xf32>
    %cst_18 = arith.constant 4.471500e-02 : f32
    %44 = vector.broadcast %cst_18 : f32 to vector<16x512xf32>
    %45 = arith.mulf %44, %43 : vector<16x512xf32>
    %46 = arith.addf %41, %45 : vector<16x512xf32>
    %cst_19 = arith.constant 0.797884583 : f32
    %47 = vector.broadcast %cst_19 : f32 to vector<16x512xf32>
    %48 = arith.mulf %47, %46 : vector<16x512xf32>
    %49 = math.tanh %48 : vector<16x512xf32>
    %cst_20 = arith.constant 1.000000e+00 : f32
    %50 = vector.broadcast %cst_20 : f32 to vector<16x512xf32>
    %51 = arith.addf %50, %49 : vector<16x512xf32>
    %cst_21 = arith.constant 5.000000e-01 : f32
    %52 = vector.broadcast %cst_21 : f32 to vector<16x512xf32>
    %53 = arith.mulf %52, %51 : vector<16x512xf32>
    %54 = arith.mulf %41, %53 : vector<16x512xf32>
    %55 = arith.truncf %54 : vector<16x512xf32> to vector<16x512xbf16>
    %c0_22 = arith.constant 0 : index
    %c0_23 = arith.constant 0 : index
    %56 = vector.load %arg6[%c0_22, %c0_23] : memref<512x128xbf16, #tpu.memory_space<vmem>>, vector<512x128xbf16>
    %cst_24 = arith.constant dense<0.000000e+00> : vector<16x128xf32>
    %57 = tpu.matmul %55, %56, %cst_24 {dimension_numbers = #tpu.dot_dimension_numbers<[1], [0], [0], [1], [0, 0, 1, 1], [], []>} : vector<16x512xbf16>, vector<512x128xbf16>, vector<16x128xf32> -> vector<16x128xf32>
    %c0_25 = arith.constant 0 : index
    %c0_26 = arith.constant 0 : index
    %58 = vector.load %arg7[%c0_25, %c0_26] : memref<1x128xf32, #tpu.memory_space<vmem>>, vector<1x128xf32>
    %59 = vector.broadcast %58 : vector<1x128xf32> to vector<16x128xf32>
    %60 = arith.addf %57, %59 : vector<16x128xf32>
    %61 = arith.addf %0, %60 : vector<16x128xf32>
    %c0_27 = arith.constant 0 : index
    %c0_28 = arith.constant 0 : index
    %62 = vector.load %arg8[%c0_27, %c0_28] : memref<16x128xf32, #tpu.memory_space<vmem>>, vector<16x128xf32>
    tpu.vector_store %arg8[%c0_27, %c0_28], %61 {strides = array<i32>} : memref<16x128xf32, #tpu.memory_space<vmem>>, vector<16x128xf32>,
    return
  }
  func.func @transform_0(%arg0: i32) -> (i32, i32) {
    %c0_i32 = arith.constant 0 : i32
    %c0_i32_0 = arith.constant 0 : i32
    return %arg0, %c0_i32 : i32, i32
  }
  func.func @transform_1(%arg0: i32) -> (i32, i32) {
    %c0_i32 = arith.constant 0 : i32
    %c0_i32_0 = arith.constant 0 : i32
    %c0_i32_1 = arith.constant 0 : i32
    return %c0_i32, %c0_i32_0 : i32, i32
  }
  func.func @transform_2(%arg0: i32) -> (i32, i32) {
    %c0_i32 = arith.constant 0 : i32
    %c0_i32_0 = arith.constant 0 : i32
    %c0_i32_1 = arith.constant 0 : i32
    return %c0_i32, %c0_i32_0 : i32, i32
  }
  func.func @transform_3(%arg0: i32) -> (i32, i32) {
    %c0_i32 = arith.constant 0 : i32
    %c0_i32_0 = arith.constant 0 : i32
    %c0_i32_1 = arith.constant 0 : i32
    return %c0_i32, %c0_i32_0 : i32, i32
  }
  func.func @transform_4(%arg0: i32) -> (i32, i32) {
    %c0_i32 = arith.constant 0 : i32
    %c0_i32_0 = arith.constant 0 : i32
    %c0_i32_1 = arith.constant 0 : i32
    return %c0_i32, %c0_i32_0 : i32, i32
  }
  func.func @transform_5(%arg0: i32) -> (i32, i32) {
    %c0_i32 = arith.constant 0 : i32
    %c0_i32_0 = arith.constant 0 : i32
    %c0_i32_1 = arith.constant 0 : i32
    return %c0_i32, %c0_i32_0 : i32, i32
  }
  func.func @transform_6(%arg0: i32) -> (i32, i32) {
    %c0_i32 = arith.constant 0 : i32
    %c0_i32_0 = arith.constant 0 : i32
    %c0_i32_1 = arith.constant 0 : i32
    return %c0_i32, %c0_i32_0 : i32, i32
  }
  func.func @transform_7(%arg0: i32) -> (i32, i32) {
    %c0_i32 = arith.constant 0 : i32
    %c0_i32_0 = arith.constant 0 : i32
    return %arg0, %c0_i32 : i32, i32
  }
}

</mosaic_0001>

<bundles_post_ra>
// kernel: tpu_custom_call.1
= control target key start
LH: loop header
LB: loop body
LE: loop exit
PB: predicated region body
PF: predicated region fallthrough
CT: control target
= control target key end

     0   :  { %12 = vsyncpa [#allocation3], 0  ;;  %s1343_s0 = inlined_call_operand.hbm [shape: f32[16,128], index: 0, kind: input, shape index: {}]   ;;  %s1344_s1 = inlined_call_operand.vmem [shape: f32[1,128], index: 1, kind: input, shape index: {}]   ;;  %s1345_s2 = inlined_call_operand.vmem [shape: f32[1,128], index: 2, kind: input, shape index: {}]   ;;  %s1346_s3 = inlined_call_operand.hbm [shape: bf16[128,512], index: 3, kind: input, shape index: {}]   ;;  %s1347_s4 = inlined_call_operand.vmem [shape: f32[1,512], index: 4, kind: input, shape index: {}]   ;;  %s1348_s5 = inlined_call_operand.hbm [shape: bf16[512,128], index: 5, kind: input, shape index: {}]   ;;  %s1349_s6 = inlined_call_operand.vmem [shape: f32[1,128], index: 6, kind: input, shape index: {}]   ;;  %s1350_s7 = inlined_call_operand.hbm [shape: f32[16,128], index: 7, kind: output, shape index: {}]  }
   0x1   :  { %13 = vsyncpa [#allocation6], 0 }
   0x2   :  { %14 = vsyncpa [#allocation4], 0  ;;  %s1186_s24 = smov [#allocation5]  }
   0x3   :  { %s36_s25 = sshll.u32 %s1186_s24, 4  ;;  %s37_s25 = int_to_ptr.vmem [resolvable:$true] %s36_s25 }
   0x4   :  { %s1108_s26 = scalar_lea.vmem %s37_s25, 4096  ;;  %p1113_p1 = scmp.lt.s32.totalorder %s37_s25, %s37_s25 }
   0x5   :  { %p1109_p0 = scmp.ne.s32.totalorder %s37_s25, %s1108_s26  ;;  %p1114_p2 = scmp.lt.s32.totalorder %s1108_s26, %s1108_s26 }
   0x7   :  { %p1115_p3 = por %p1114_p2, %p1113_p1 }
   0x9   :  { %p1116_p4 = pnand %p1115_p3, %p1109_p0 }
   0xb   :  { %1119 = shalt.err (!%p1116_p4)
}
   0xc   :  { %s1187_s27 = smov 256   ;;  %s1188_s28 = smov 16  }
   0xd   :  { %42 = dma.hbm_to_vmem [thread:$0]  %s1346_s3, 4096, %s37_s25, [#allocation6], %s1187_s27, %s1187_s27, %s1188_s28  }
   0xe   :  { %s1189_s8 = smov [#allocation2]  }
   0xf   :  { %s20_s9 = sshll.u32 %s1189_s8, 4  ;;  %s21_s9 = int_to_ptr.vmem [resolvable:$true] %s20_s9 }
  0x10   :  { %s1128_s10 = scalar_lea.vmem %s21_s9, 256  ;;  %p1133_p6 = scmp.lt.s32.totalorder %s21_s9, %s21_s9 }
  0x11   :  { %p1129_p5 = scmp.ne.s32.totalorder %s21_s9, %s1128_s10  ;;  %p1134_p7 = scmp.lt.s32.totalorder %s1128_s10, %s1128_s10 }
  0x13   :  { %p1135_p8 = por %p1134_p7, %p1133_p6 }
  0x15   :  { %p1136_p9 = pnand %p1135_p8, %p1129_p5 }
  0x17   :  { %1139 = shalt.err (!%p1136_p9)
}
  0x18   :  { %s1190_s11 = smov 128   ;;  %s1191_s12 = smov 8  }
  0x19   :  { %26 = dma.hbm_to_vmem [thread:$0]  %s1343_s0, 256, %s21_s9, [#allocation3], %s1190_s11, %s1190_s11, %s1191_s12  }
  0x1a   :  { %s1192_s3 = smov [#allocation7]  }
  0x1b   :  { %s50_s15 = sshll.u32 %s1192_s3, 4  ;;  %s51_s15 = int_to_ptr.vmem [resolvable:$true] %s50_s15 }
  0x1c   :  { %s1148_s16 = scalar_lea.vmem %s51_s15, 4096  ;;  %p1153_p11 = scmp.lt.s32.totalorder %s51_s15, %s51_s15 }
  0x1d   :  { %p1149_p10 = scmp.ne.s32.totalorder %s51_s15, %s1148_s16  ;;  %p1154_p12 = scmp.lt.s32.totalorder %s1148_s16, %s1148_s16 }
  0x1f   :  { %p1155_p13 = por %p1154_p12, %p1153_p11 }
  0x21   :  { %p1156_p0 = pnand %p1155_p13, %p1149_p10 }
  0x23   :  { %1159 = shalt.err (!%p1156_p0)
}
  0x24   :  { %s1193_s17 = smov 64   ;;  %s1194_s18 = smov 4  }
  0x25   :  { %56 = dma.hbm_to_vmem [thread:$0]  %s1348_s5, 4096, %s51_s15, [#allocation6], %s1193_s17, %s1193_s17, %s1194_s18  }
  0x26   :  { %1180 = dma.done.wait [#allocation3], 256  }
  0x27   :  { %1181 = vsyncadd [#allocation3], 4294967040 }
  0x28   :  { %1182 = dma.done.wait [#allocation6], 8192  }
  0x29   :  { %1183 = vsyncadd [#allocation6], 4294959104  ;;  %v1249_v0 = vld [vmem:[#allocation2] sm:$0xff]  ;;  %v1251_v1 = vld [vmem:[#allocation2 + $0x8] sm:$0xff]  ;;  %v1195_v28 = vmov 0   ;;  %s1196_s24 = smov [#allocation8]  }
  0x2a   :  { %71 = vadd.xlane.f32.xlu0 %v1249_v0  ;;  %v996_v10 = vld [vmem:[#allocation5 + $0xe4] ss:$16 sps:$4 sm:$0xff]   ;;  %v998_v11 = vld [vmem:[#allocation5 + $0xec] ss:$16 sps:$4 sm:$0xff]   ;;  %v1000_v12 = vld [vmem:[#allocation5 + $0xe0] ss:$16 sps:$4 sm:$0xff]   ;;  %377 = vmatprep.mubr.bf16.mxu0 %v1195_v28 }
  0x2b   :  { %v1001_v13 = vld [vmem:[#allocation5 + $0xe8] ss:$16 sps:$4 sm:$0xff]   ;;  %v1002_v14 = vld [vmem:[#allocation5 + $0xc4] ss:$16 sps:$4 sm:$0xff]   ;;  %v1004_v15 = vld [vmem:[#allocation5 + $0xcc] ss:$16 sps:$4 sm:$0xff]   ;;  %345 = vmatprep.subr.bf16.mxu0 %v996_v10  ;;  %388 = vmatprep.subr.bf16.mxu1 %v998_v11 }
  0x2c   :  { %346 = vmatpush1.bf16.msra.mxu0 %v1000_v12  ;;  %389 = vmatpush1.bf16.msra.mxu1 %v1001_v13  ;;  %v1006_v16 = vld [vmem:[#allocation5 + $0xc0] ss:$16 sps:$4 sm:$0xff]   ;;  %v1007_v17 = vld [vmem:[#allocation5 + $0xc8] ss:$16 sps:$4 sm:$0xff]   ;;  %v1008_v18 = vld [vmem:[#allocation5 + $0xa4] ss:$16 sps:$4 sm:$0xff]  }
  0x2d   :  { %347 = vmatprep.subr.bf16.mxu0 %v1002_v14  ;;  %390 = vmatprep.subr.bf16.mxu1 %v1004_v15  ;;  %v1010_v19 = vld [vmem:[#allocation5 + $0xac] ss:$16 sps:$4 sm:$0xff]   ;;  %v1012_v20 = vld [vmem:[#allocation5 + $0xa0] ss:$16 sps:$4 sm:$0xff]   ;;  %v1013_v21 = vld [vmem:[#allocation5 + $0xa8] ss:$16 sps:$4 sm:$0xff]  }
  0x2e   :  { %73 = vadd.xlane.f32.xlu0 %v1251_v1  ;;  %v1014_v22 = vld [vmem:[#allocation5 + $0x84] ss:$16 sps:$4 sm:$0xff]   ;;  %v1016_v23 = vld [vmem:[#allocation5 + $0x8c] ss:$16 sps:$4 sm:$0xff]   ;;  %v1018_v24 = vld [vmem:[#allocation5 + $0x80] ss:$16 sps:$4 sm:$0xff]   ;;  %420 = vmatprep.mubr.bf16.mxu1 %v1195_v28 }
  0x2f   :  { %v1019_v25 = vld [vmem:[#allocation5 + $0x88] ss:$16 sps:$4 sm:$0xff]   ;;  %v1020_v26 = vld [vmem:[#allocation5 + $0x64] ss:$16 sps:$4 sm:$0xff]   ;;  %v1022_v27 = vld [vmem:[#allocation5 + $0x6c] ss:$16 sps:$4 sm:$0xff]  }
  0x30   :  { %348 = vmatpush1.bf16.msra.mxu0 %v1006_v16  ;;  %391 = vmatpush1.bf16.msra.mxu1 %v1007_v17  ;;  %v1024_v29 = vld [vmem:[#allocation5 + $0x60] ss:$16 sps:$4 sm:$0xff]   ;;  %v1025_v30 = vld [vmem:[#allocation5 + $0x68] ss:$16 sps:$4 sm:$0xff]   ;;  %v1026_v31 = vld [vmem:[#allocation5 + $0x44] ss:$16 sps:$4 sm:$0xff]  }
  0x31   :  { %349 = vmatprep.subr.bf16.mxu0 %v1008_v18  ;;  %392 = vmatprep.subr.bf16.mxu1 %v1010_v19  ;;  %v1028_v32 = vld [vmem:[#allocation5 + $0x4c] ss:$16 sps:$4 sm:$0xff]   ;;  %v1030_v33 = vld [vmem:[#allocation5 + $0x40] ss:$16 sps:$4 sm:$0xff]   ;;  %v1031_v34 = vld [vmem:[#allocation5 + $0x48] ss:$16 sps:$4 sm:$0xff]  }
  0x32   :  { %v1032_v35 = vld [vmem:[#allocation5 + $0x24] ss:$16 sps:$4 sm:$0xff]   ;;  %v1034_v36 = vld [vmem:[#allocation5 + $0x2c] ss:$16 sps:$4 sm:$0xff]   ;;  %v1036_v37 = vld [vmem:[#allocation5 + $0x20] ss:$16 sps:$4 sm:$0xff]  }
  0x33   :  { %v1037_v38 = vld [vmem:[#allocation5 + $0x28] ss:$16 sps:$4 sm:$0xff]   ;;  %v1038_v39 = vld [vmem:[#allocation5 + $0x4] ss:$16 sps:$4 sm:$0xff]   ;;  %v1040_v40 = vld [vmem:[#allocation5 + $0xc] ss:$16 sps:$4 sm:$0xff]  }
  0x34   :  { %350 = vmatpush1.bf16.msra.mxu0 %v1012_v20  ;;  %393 = vmatpush1.bf16.msra.mxu1 %v1013_v21  ;;  %v1042_v41 = vld [vmem:[#allocation5] ss:$16 sps:$4 sm:$0xff]   ;;  %v1043_v42 = vld [vmem:[#allocation5 + $0x8] ss:$16 sps:$4 sm:$0xff]   ;;  %s861_s25 = sshll.u32 %s1196_s24, 4  ;;  %s862_s25 = int_to_ptr.vmem [resolvable:$true] %s861_s25 }
  0x35   :  { %351 = vmatprep.subr.bf16.mxu0 %v1014_v22  ;;  %394 = vmatprep.subr.bf16.mxu1 %v1016_v23  ;;  %v874_v50 = vld [vmem:[%s1344_s1] ss:$0 sm:$0xff]  ;;  %v1044_v16 = vld [vmem:[#allocation7 + $0x78] sm:$0xff]   ;;  %v1056_v28 = vld [vmem:[#allocation7 + $0x60] sm:$0xff]   ;;  %p1165_p2 = scmp.lt.s32.totalorder %s862_s25, %s862_s25 }
  0x36   :  { %v875_v52 = vld [vmem:[%s1345_s2] ss:$0 sm:$0xff]  ;;  %v1045_v17 = vld [vmem:[#allocation7 + $0xf8] sm:$0xff]  }
  0x37   :  { %v1046_v18 = vld [vmem:[#allocation7 + $0x38] sm:$0xff]   ;;  %v1048_v20 = vld [vmem:[#allocation7 + $0x70] sm:$0xff]  }
  0x38   :  { %352 = vmatpush1.bf16.msra.mxu0 %v1018_v24  ;;  %395 = vmatpush1.bf16.msra.mxu1 %v1019_v25  ;;  %v1047_v19 = vld [vmem:[#allocation7 + $0xb8] sm:$0xff]   ;;  %v1049_v21 = vld [vmem:[#allocation7 + $0xf0] sm:$0xff]   ;;  %v1052_v24 = vld [vmem:[#allocation7 + $0x68] sm:$0xff]  }
  0x39   :  { %353 = vmatprep.subr.bf16.mxu0 %v1020_v26  ;;  %396 = vmatprep.subr.bf16.mxu1 %v1022_v27  ;;  %v1050_v22 = vld [vmem:[#allocation7 + $0x30] sm:$0xff]   ;;  %v1053_v25 = vld [vmem:[#allocation7 + $0xe8] sm:$0xff]  }
  0x3a   :  { %v1051_v23 = vld [vmem:[#allocation7 + $0xb0] sm:$0xff]   ;;  %v1054_v26 = vld [vmem:[#allocation7 + $0x28] sm:$0xff]  }
  0x3b   :  { %v1055_v27 = vld [vmem:[#allocation7 + $0xa8] sm:$0xff]  }
  0x3c   :  { %354 = vmatpush1.bf16.msra.mxu0 %v1024_v29  ;;  %397 = vmatpush1.bf16.msra.mxu1 %v1025_v30  ;;  %v1057_v29 = vld [vmem:[#allocation7 + $0xe0] sm:$0xff]  }
  0x3d   :  { %355 = vmatprep.subr.bf16.mxu0 %v1026_v31  ;;  %398 = vmatprep.subr.bf16.mxu1 %v1028_v32  ;;  %v1058_v30 = vld [vmem:[#allocation7 + $0x20] sm:$0xff]   ;;  %v1060_v32 = vld [vmem:[#allocation7 + $0x58] sm:$0xff]  }
  0x3e   :  { %v1059_v31 = vld [vmem:[#allocation7 + $0xa0] sm:$0xff]  }
  0x40   :  { %356 = vmatpush1.bf16.msra.mxu0 %v1030_v33  ;;  %399 = vmatpush1.bf16.msra.mxu1 %v1031_v34  ;;  %v1061_v33 = vld [vmem:[#allocation7 + $0xd8] sm:$0xff]  }
  0x41   :  { %357 = vmatprep.subr.bf16.mxu0 %v1032_v35  ;;  %400 = vmatprep.subr.bf16.mxu1 %v1034_v36  ;;  %v1062_v34 = vld [vmem:[#allocation7 + $0x18] sm:$0xff]   ;;  %v1064_v36 = vld [vmem:[#allocation7 + $0x50] sm:$0xff]  }
  0x42   :  { %v1063_v35 = vld [vmem:[#allocation7 + $0x98] sm:$0xff]  }
  0x44   :  { %358 = vmatpush1.bf16.msra.mxu0 %v1036_v37  ;;  %401 = vmatpush1.bf16.msra.mxu1 %v1037_v38  ;;  %v1065_v37 = vld [vmem:[#allocation7 + $0xd0] sm:$0xff]  }
  0x45   :  { %359 = vmatprep.subr.bf16.mxu0 %v1038_v39  ;;  %402 = vmatprep.subr.bf16.mxu1 %v1040_v40  ;;  %v1066_v38 = vld [vmem:[#allocation7 + $0x10] sm:$0xff]   ;;  %v1068_v40 = vld [vmem:[#allocation7 + $0x48] sm:$0xff]  }
  0x46   :  { %v1067_v39 = vld [vmem:[#allocation7 + $0x90] sm:$0xff]  }
  0x48   :  { %360 = vmatpush1.bf16.msra.mxu0 %v1042_v41  ;;  %403 = vmatpush1.bf16.msra.mxu1 %v1043_v42  ;;  %v1069_v41 = vld [vmem:[#allocation7 + $0xc8] sm:$0xff]  }
  0x49   :  { %941 = vmatprep.subr.bf16.mxu0 %v1044_v16  ;;  %963 = vmatprep.subr.bf16.mxu1 %v1045_v17  ;;  %v1070_v42 = vld [vmem:[#allocation7 + $0x8] sm:$0xff]  }
  0xb3   :  { %v72_v2 = vpop.xlane.xlu0 %71 }
  0xb4   :  { %v76_v3 = vmul.f32 0.0078125, %v72_v2 }
  0xb6   :  { %v1256_v4 = vsub.f32 %v1249_v0, %v76_v3 }
  0xb7   :  { %v74_v5 = vpop.xlane.xlu0 %73 }
  0xb8   :  { %v77_v6 = vmul.f32 0.0078125, %v74_v5  ;;  %v80_v7 = vmul.f32 %v1256_v4, %v1256_v4 }
  0xba   :  { %v1261_v8 = vsub.f32 %v1251_v1, %v77_v6  ;;  %82 = vadd.xlane.f32.xlu1 %v80_v7 }
  0xbc   :  { %v81_v9 = vmul.f32 %v1261_v8, %v1261_v8 }
  0xbe   :  { %84 = vadd.xlane.f32.xlu1 %v81_v9 }
 0x143   :  { %v83_v43 = vpop.xlane.xlu1 %82 }
 0x144   :  { %v86_v44 = vmul.f32 0.0078125, %v83_v43  ;;  %v1071_v43 = vld [vmem:[#allocation7 + $0x88] sm:$0xff]  }
 0x146   :  { %v88_v45 = vadd.f32 1e-05, %v86_v44  ;;  %v1072_v44 = vld [vmem:[#allocation7 + $0x40] sm:$0xff]  }
 0x147   :  { %v85_v46 = vpop.xlane.xlu1 %84 }
 0x148   :  { %1076 = vrsqrt.f32 %v88_v45  ;;  %v87_v47 = vmul.f32 0.0078125, %v85_v46  ;;  %v1073_v45 = vld [vmem:[#allocation7 + $0xc0] sm:$0xff]  }
 0x149   :  { %v1074_v46 = vld [vmem:[#allocation7] sm:$0xff]  }
 0x14a   :  { %v89_v48 = vadd.f32 1e-05, %v87_v47  ;;  %v1075_v47 = vld [vmem:[#allocation7 + $0x80] sm:$0xff]  }
 0x14c   :  { %1078 = vrsqrt.f32 %v89_v48  ;;  %v165_v48 = vlaneseq }
 0x155   :  { %v1077_v49 = vpop.eup %1076 }
 0x156   :  { %v92_v51 = vmul.f32 %v1077_v49, %v1256_v4  ;;  %v166_v49 = vshrl.u32 %v165_v48, 7 }
 0x158   :  { %v101_v53 = vmul.f32 %v874_v50, %v92_v51  ;;  %v175_v51 = vsub.s32 2, %v166_v49 }
 0x159   :  { %v1079_v54 = vpop.eup %1078 }
 0x15a   :  { %v93_v55 = vmul.f32 %v1079_v54, %v1261_v8  ;;  %v110_v56 = vadd.f32 %v875_v52, %v101_v53  ;;  %v171_v53 = vsub.s32 1, %v166_v49  ;;  %v179_v54 = vsub.s32 3, %v166_v49 }
 0x15c   :  { %v102_v57 = vmul.f32 %v874_v50, %v93_v55  ;;  %v112_v58 = vmul.f32 %v110_v56, %v110_v56  ;;  %v167_v50 = vsub.s32 0, %v166_v49 }
 0x15e   :  { %v111_v59 = vadd.f32 %v875_v52, %v102_v57  ;;  %v114_v60 = vmul.f32 %v112_v58, %v110_v56  ;;  %v163_v52 = vld [vmem:[%s1347_s4] sm:$0xf] }
 0x15f   :  { %v168_v55 = vrot.slane %v163_v52, %v167_v50  ;;  %v172_v57 = vrot.slane %v163_v52, %v171_v53  ;;  %v180_v58 = vrot.slane %v163_v52, %v179_v54 }
 0x160   :  { %v113_v61 = vmul.f32 %v111_v59, %v111_v59  ;;  %v116_v62 = vmul.f32 0.044715, %v114_v60 }
 0x162   :  { %v115_v63 = vmul.f32 %v113_v61, %v111_v59  ;;  %v118_v2 = vadd.f32 %v116_v62, %v110_v56 }
 0x164   :  { %v117_v3 = vmul.f32 0.044715, %v115_v63  ;;  %v120_v5 = vmul.f32 0.7978846, %v118_v2 }
 0x166   :  { %v119_v4 = vadd.f32 %v117_v3, %v111_v59  ;;  %1080 = vtanh.f32 %v120_v5 }
 0x168   :  { %v121_v6 = vmul.f32 0.7978846, %v119_v4 }
 0x16a   :  { %1082 = vtanh.f32 %v121_v6 }
 0x173   :  { %v1081_v7 = vpop.eup %1080 }
 0x174   :  { %v124_v9 = vadd.f32 1.0, %v1081_v7 }
 0x176   :  { %v126_v8 = vmul.f32 0.5, %v124_v9 }
 0x177   :  { %v1083_v10 = vpop.eup %1082 }
 0x178   :  { %v125_v11 = vadd.f32 1.0, %v1083_v10  ;;  %v128_v13 = vmul.f32 %v126_v8, %v110_v56  ;;  %v176_v56 = vrot.slane %v163_v52, %v175_v51 }
 0x17a   :  { %v127_v12 = vmul.f32 0.5, %v125_v11 }
 0x17c   :  { %v129_v14 = vmul.f32 %v127_v12, %v111_v59 }
 0x17e   :  { %v130_v15 = vpack.c.bf16 %v129_v14, %v128_v13 }
 0x180   :  { %378 = vmatmul.mubr.bf16.vlgmr.msra.gmra.mxu0 %v130_v15  ;;  %421 = vmatmul.mubr.bf16.vlgmr.msra.gmra.mxu1 %v130_v15 }
 0x181   :  { %942 = vmatpush3.bf16.msra.mxu0 %v1046_v18  ;;  %964 = vmatpush3.bf16.msra.mxu1 %v1047_v19 }
 0x182   :  { %943 = vmatprep.subr.bf16.mxu0 %v1048_v20  ;;  %965 = vmatprep.subr.bf16.mxu1 %v1049_v21 }
 0x185   :  { %944 = vmatpush3.bf16.msra.mxu0 %v1050_v22  ;;  %966 = vmatpush3.bf16.msra.mxu1 %v1051_v23 }
 0x186   :  { %945 = vmatprep.subr.bf16.mxu0 %v1052_v24  ;;  %967 = vmatprep.subr.bf16.mxu1 %v1053_v25 }
 0x189   :  { %946 = vmatpush3.bf16.msra.mxu0 %v1054_v26  ;;  %968 = vmatpush3.bf16.msra.mxu1 %v1055_v27 }
 0x18a   :  { %947 = vmatprep.subr.bf16.mxu0 %v1056_v28  ;;  %969 = vmatprep.subr.bf16.mxu1 %v1057_v29 }
 0x18d   :  { %948 = vmatpush3.bf16.msra.mxu0 %v1058_v30  ;;  %970 = vmatpush3.bf16.msra.mxu1 %v1059_v31 }
 0x18e   :  { %949 = vmatprep.subr.bf16.mxu0 %v1060_v32  ;;  %971 = vmatprep.subr.bf16.mxu1 %v1061_v33 }
 0x191   :  { %950 = vmatpush3.bf16.msra.mxu0 %v1062_v34  ;;  %972 = vmatpush3.bf16.msra.mxu1 %v1063_v35 }
 0x192   :  { %951 = vmatprep.subr.bf16.mxu0 %v1064_v36  ;;  %973 = vmatprep.subr.bf16.mxu1 %v1065_v37 }
 0x195   :  { %952 = vmatpush3.bf16.msra.mxu0 %v1066_v38  ;;  %974 = vmatpush3.bf16.msra.mxu1 %v1067_v39 }
 0x196   :  { %953 = vmatprep.subr.bf16.mxu0 %v1068_v40  ;;  %975 = vmatprep.subr.bf16.mxu1 %v1069_v41 }
 0x199   :  { %954 = vmatpush3.bf16.msra.mxu0 %v1070_v42  ;;  %976 = vmatpush3.bf16.msra.mxu1 %v1071_v43 }
 0x19a   :  { %955 = vmatprep.subr.bf16.mxu0 %v1072_v44  ;;  %977 = vmatprep.subr.bf16.mxu1 %v1073_v45 }
 0x19d   :  { %956 = vmatpush3.bf16.msra.mxu0 %v1074_v46  ;;  %978 = vmatpush3.bf16.msra.mxu1 %v1075_v47 }
 0x240   :  { %v379_v59 = vpop.f32.mrf.mxu0  ;;  %v422_v60 = vpop.f32.mrf.mxu1 }
 0x241   :  { %v1276_v61 = vadd.f32 %v379_v59, %v168_v55  ;;  %v1278_v62 = vadd.f32 %v422_v60, %v176_v56 }
 0x242   :  { %v381_v63 = vpop.f32.mrf.mxu0  ;;  %v424_v2 = vpop.f32.mrf.mxu1 }
 0x243   :  { %v431_v3 = vmul.f32 %v1276_v61, %v1276_v61  ;;  %v433_v5 = vmul.f32 %v1278_v62, %v1278_v62  ;;  %v1284_v4 = vadd.f32 %v381_v63, %v172_v57  ;;  %v1286_v6 = vadd.f32 %v424_v2, %v180_v58 }
 0x244   :  { %v383_v7 = vpop.f32.mrf.mxu0  ;;  %v426_v9 = vpop.f32.mrf.mxu1 }
 0x245   :  { %v439_v10 = vmul.f32 %v431_v3, %v1276_v61  ;;  %v441_v11 = vmul.f32 %v433_v5, %v1278_v62  ;;  %v432_v8 = vmul.f32 %v1284_v4, %v1284_v4  ;;  %v434_v12 = vmul.f32 %v1286_v6, %v1286_v6 }
 0x246   :  { %v1294_v13 = vadd.f32 %v383_v7, %v168_v55  ;;  %v1296_v14 = vadd.f32 %v426_v9, %v176_v56  ;;  %v385_v15 = vpop.f32.mrf.mxu0  ;;  %v428_v16 = vpop.f32.mrf.mxu1 }
 0x247   :  { %v447_v17 = vmul.f32 0.044715, %v439_v10  ;;  %v449_v18 = vmul.f32 0.044715, %v441_v11  ;;  %v440_v19 = vmul.f32 %v432_v8, %v1284_v4  ;;  %v442_v20 = vmul.f32 %v434_v12, %v1286_v6 }
 0x248   :  { %v435_v21 = vmul.f32 %v1294_v13, %v1294_v13  ;;  %v437_v22 = vmul.f32 %v1296_v14, %v1296_v14  ;;  %v1304_v23 = vadd.f32 %v385_v15, %v172_v57  ;;  %v1306_v24 = vadd.f32 %v428_v16, %v180_v58 }
 0x249   :  { %v455_v25 = vadd.f32 %v447_v17, %v1276_v61  ;;  %v457_v26 = vadd.f32 %v449_v18, %v1278_v62  ;;  %v448_v27 = vmul.f32 0.044715, %v440_v19  ;;  %v450_v28 = vmul.f32 0.044715, %v442_v20 }
 0x24a   :  { %v443_v29 = vmul.f32 %v435_v21, %v1294_v13  ;;  %v445_v30 = vmul.f32 %v437_v22, %v1296_v14  ;;  %v436_v31 = vmul.f32 %v1304_v23, %v1304_v23  ;;  %v438_v32 = vmul.f32 %v1306_v24, %v1306_v24 }
 0x24b   :  { %v463_v33 = vmul.f32 0.7978846, %v455_v25  ;;  %v465_v34 = vmul.f32 0.7978846, %v457_v26  ;;  %v456_v35 = vadd.f32 %v448_v27, %v1284_v4  ;;  %v458_v36 = vadd.f32 %v450_v28, %v1286_v6 }
 0x24c   :  { %v451_v37 = vmul.f32 0.044715, %v443_v29  ;;  %v453_v38 = vmul.f32 0.044715, %v445_v30  ;;  %v444_v39 = vmul.f32 %v436_v31, %v1304_v23  ;;  %v446_v40 = vmul.f32 %v438_v32, %v1306_v24 }
 0x24d   :  { %1084 = vtanh.f32 %v463_v33  ;;  %v464_v41 = vmul.f32 0.7978846, %v456_v35  ;;  %v466_v42 = vmul.f32 0.7978846, %v458_v36 }
 0x24e   :  { %1086 = vtanh.f32 %v465_v34  ;;  %v459_v43 = vadd.f32 %v451_v37, %v1294_v13  ;;  %v461_v44 = vadd.f32 %v453_v38, %v1296_v14  ;;  %v452_v45 = vmul.f32 0.044715, %v444_v39 }
 0x24f   :  { %1088 = vtanh.f32 %v464_v41  ;;  %v454_v46 = vmul.f32 0.044715, %v446_v40 }
 0x250   :  { %1090 = vtanh.f32 %v466_v42  ;;  %v467_v47 = vmul.f32 0.7978846, %v459_v43  ;;  %v469_v48 = vmul.f32 0.7978846, %v461_v44  ;;  %v460_v49 = vadd.f32 %v452_v45, %v1304_v23 }
 0x251   :  { %v462_v50 = vadd.f32 %v454_v46, %v1306_v24 }
 0x252   :  { %1092 = vtanh.f32 %v467_v47  ;;  %v468_v51 = vmul.f32 0.7978846, %v460_v49 }
 0x253   :  { %1094 = vtanh.f32 %v469_v48  ;;  %v470_v52 = vmul.f32 0.7978846, %v462_v50 }
 0x254   :  { %1096 = vtanh.f32 %v468_v51 }
 0x255   :  { %1098 = vtanh.f32 %v470_v52 }
 0x25a   :  { %v1085_v53 = vpop.eup %1084 }
 0x25b   :  { %v1087_v54 = vpop.eup %1086  ;;  %v479_v59 = vadd.f32 1.0, %v1085_v53 }
 0x25c   :  { %v1089_v55 = vpop.eup %1088  ;;  %v481_v2 = vadd.f32 1.0, %v1087_v54 }
 0x25d   :  { %v1091_v56 = vpop.eup %1090  ;;  %v480_v57 = vadd.f32 1.0, %v1089_v55  ;;  %v487_v12 = vmul.f32 0.5, %v479_v59 }
 0x25e   :  { %v482_v60 = vadd.f32 1.0, %v1091_v56  ;;  %v489_v18 = vmul.f32 0.5, %v481_v2 }
 0x25f   :  { %v1093_v58 = vpop.eup %1092  ;;  %v488_v8 = vmul.f32 0.5, %v480_v57  ;;  %v495_v27 = vmul.f32 %v487_v12, %v1276_v61  ;;  %v908_v61 = vld [vmem:[%s1349_s6] ss:$0 sm:$0xff]  ;;  %s1160_s6 = scalar_lea.vmem %s862_s25, 256 }
 0x260   :  { %v1095_v63 = vpop.eup %1094  ;;  %v483_v3 = vadd.f32 1.0, %v1093_v58  ;;  %v490_v17 = vmul.f32 0.5, %v482_v60  ;;  %v497_v30 = vmul.f32 %v489_v18, %v1278_v62  ;;  %p1161_p1 = scmp.ne.s32.totalorder %s862_s25, %s1160_s6  ;;  %p1166_p3 = scmp.lt.s32.totalorder %s1160_s6, %s1160_s6 }
 0x261   :  { %v1097_v5 = vpop.eup %1096  ;;  %v485_v7 = vadd.f32 1.0, %v1095_v63  ;;  %v496_v25 = vmul.f32 %v488_v8, %v1284_v4 }
 0x262   :  { %v1099_v9 = vpop.eup %1098  ;;  %v491_v10 = vmul.f32 0.5, %v483_v3  ;;  %v484_v11 = vadd.f32 1.0, %v1097_v5  ;;  %v498_v28 = vmul.f32 %v490_v17, %v1286_v6  ;;  %p1167_p4 = por %p1166_p3, %p1165_p2 }
 0x263   :  { %v493_v15 = vmul.f32 0.5, %v485_v7  ;;  %v486_v16 = vadd.f32 1.0, %v1099_v9 }
 0x264   :  { %v492_v19 = vmul.f32 0.5, %v484_v11  ;;  %v499_v20 = vmul.f32 %v491_v10, %v1294_v13  ;;  %p1168_p5 = pnand %p1167_p4, %p1161_p1 }
 0x265   :  { %v494_v21 = vmul.f32 0.5, %v486_v16  ;;  %v501_v22 = vmul.f32 %v493_v15, %v1296_v14 }
 0x266   :  { %v500_v26 = vmul.f32 %v492_v19, %v1304_v23  ;;  %v503_v33 = vpack.c.bf16 %v499_v20, %v495_v27 }
 0x267   :  { %v502_v29 = vmul.f32 %v494_v21, %v1306_v24  ;;  %v505_v13 = vpack.c.bf16 %v501_v22, %v497_v30 }
 0x268   :  { %v504_v31 = vpack.c.bf16 %v500_v26, %v496_v25 }
 0x269   :  { %v506_v32 = vpack.c.bf16 %v502_v29, %v498_v28 }
 0x26a   :  { %802 = vmatprep.mubr.bf16.mxu0 %v504_v31 }
 0x26b   :  { %843 = vmatprep.mubr.bf16.mxu1 %v506_v32  ;;  %803 = vmatmul.mubr.bf16.vlgmr.msra.gmra.mxu0 %v503_v33 }
 0x26c   :  { %844 = vmatmul.mubr.bf16.vlgmr.msra.gmra.mxu1 %v505_v13 }
 0x32b   :  { %v957_v14 = vpop.f32.mrf.mxu0 }
 0x32c   :  { %v979_v4 = vpop.f32.mrf.mxu1 }
 0x32d   :  { %v958_v23 = vpop.f32.mrf.mxu0 }
 0x32e   :  { %v959_v6 = vadd.f32 %v958_v23, %v957_v14  ;;  %v980_v34 = vpop.f32.mrf.mxu1 }
 0x32f   :  { %v960_v24 = vpop.f32.mrf.mxu0  ;;  %v981_v62 = vadd.f32 %v980_v34, %v979_v4 }
 0x330   :  { %v805_v35 = vadd.f32 %v959_v6, %v908_v61  ;;  %v982_v36 = vpop.f32.mrf.mxu1 }
 0x331   :  { %v961_v37 = vpop.f32.mrf.mxu0 }
 0x332   :  { %v846_v38 = vadd.f32 %v981_v62, %v805_v35  ;;  %v962_v39 = vadd.f32 %v961_v37, %v960_v24  ;;  %v983_v40 = vpop.f32.mrf.mxu1 }
 0x333   :  { %v984_v43 = vadd.f32 %v983_v40, %v982_v36 }
 0x334   :  { %v852_v41 = vadd.f32 %v846_v38, %v1249_v0  ;;  %v808_v42 = vadd.f32 %v962_v39, %v908_v61 }
 0x336   :  { %854 = vst [vmem:[#allocation8] sm:$0xff] %v852_v41  ;;  %v849_v44 = vadd.f32 %v984_v43, %v808_v42 }
 0x338   :  { %v853_v45 = vadd.f32 %v849_v44, %v1251_v1 }
 0x33a   :  { %855 = vst [vmem:[#allocation8 + $0x8] sm:$0xff] %v853_v45 }
 0x33b   :  { %1171 = shalt.err (!%p1168_p5)
}
 0x33c   :  { %867 = dma.vmem_to_hbm [thread:$0]  %s862_s25, 256, %s1350_s7, [#allocation4], %s1190_s11, %s1190_s11, %s1191_s12  }
 0x33d   :  { %1184 = dma.done.wait [#allocation4], 256  }
 0x33e   :  { %1185 = vsyncadd [#allocation4], 4294967040 }
 0x33f   :  { %871 = vsyncpa [#allocation3], 1 }
 0x340   :  { %872 = vsyncpa [#allocation6], 1 }
 0x341   :  { %873 = vsyncpa [#allocation4], 1 }

</bundles_post_ra>
